<compile_context>
chip_gen: v5e
topology: v5e:2x2
jax: 0.10.0
libtpu: 0.0.40
codegen_flags: <defaults>
</compile_context>

<pallas_src>
import jax
import jax.numpy as jnp
import numpy as np
from jax import lax
from jax.experimental import pallas as pl
from jax.experimental.pallas import tpu as pltpu

# ---------------- configuration (small shapes) ----------------
B = 2          # batch
N = 256        # points per batch (lane axis inside the kernel)
R = 8          # canonical volume resolution (vol_res)
RR = R * R

# gridwarper constants (UniformBoxWarp(scales=(1/2.5,1/2.5,1/2.0), trans=(0,0,-0.2)))
WARP_SCALES = (1.0 / 2.5, 1.0 / 2.5, 1.0 / 2.0)
WARP_TRANS = (0.0, -0.0, -0.2)


# ---------------------------------------------------------------------------
# Pallas kernel (one batch per grid step)
# ---------------------------------------------------------------------------
def deformation_kernel(xin_ref, a_ref, vol_ref, out_ref):
    """
    xin_ref: [8, N]       rows = [px, py, pz, vx, vy, vz, 1, 0]  (lane-dense points)
    a_ref:   [16, 8]      combined per-batch affine matrix:
                            rows 0..2  -> p1 = (p + t) @ Rm
                            rows 3..5  -> v1 = v @ Rm
                            rows 6..8  -> c0 = continuous sample coords, identity path
                            rows 9..11 -> c1 = continuous sample coords, transformed path
                            rows 12..15 zero padding
    vol_ref: [2*RR, 2*R]  block-diagonal weight volume (rows z*R+y, cols x; ch0 | ch1)
    out_ref: [8, N]       rows 0..2 blended pts, rows 3..5 blended view, rows 6..7 zero
    """
    n = xin_ref.shape[1]
    xin = xin_ref[...]                                                   # [8, N]

    # ---- all per-point affine math as one small MXU matmul ------------------
    t = jnp.dot(a_ref[...], xin, preferred_element_type=jnp.float32)     # [16, N]

    # ---- trilinear sample coords (align_corners=True, border padding) -------
    coords = jnp.clip(t[6:12, :], 0.0, float(R - 1))                     # [6, N]
    c0f = jnp.floor(coords)
    frac = coords - c0f                                                  # [6, N]
    i0 = c0f.astype(jnp.int32)
    i1 = jnp.minimum(i0 + 1, R - 1)

    iota_r = lax.broadcasted_iota(jnp.int32, (R, n), 0)                  # [R, N]

    def axis_weights(k):
        # one-hot-ish corner weights along one axis: [R, N] (2 vregs of VALU work)
        i0r, i1r, fr = i0[k:k + 1, :], i1[k:k + 1, :], frac[k:k + 1, :]
        return (jnp.where(iota_r == i0r, 1.0 - fr, 0.0)
                + jnp.where(iota_r == i1r, fr, 0.0))

    wx0, wy0, wz0 = axis_weights(0), axis_weights(1), axis_weights(2)
    wx1, wy1, wz1 = axis_weights(3), axis_weights(4), axis_weights(5)

    # ---- fused x-contraction for both channels on the MXU -------------------
    wx_stack = jnp.concatenate([wx0, wx1], axis=0)                       # [2R, N]
    t1 = jnp.dot(vol_ref[...], wx_stack,
                 preferred_element_type=jnp.float32)                     # [2RR, N]

    # ---- separable y/z reduction (no [RR,N] one-hot mask build) --------------
    def yz_reduce(t1_c, wy, wz):
        t3 = t1_c.reshape(R, R, n)                                       # [z, y, N]
        sy = jnp.sum(t3 * wy[None, :, :], axis=1)                        # [z, N]
        return jnp.sum(sy * wz, axis=0, keepdims=True)                   # [1, N]

    wc0 = yz_reduce(t1[0:RR, :], wy0, wz0)                               # identity path
    wc1 = yz_reduce(t1[RR:, :], wy1, wz1)                                # transformed path

    # ---- normalized blend weights: EUP reciprocal + one Newton step ---------
    denom = wc0 + wc1 + 1e-8
    r = pl.reciprocal(denom, approx=True)
    r = r * (2.0 - denom * r)                                            # NR refinement
    w0 = wc0 * r
    w1 = wc1 * r

    # ---- blend identity path (input rows 0..5) vs transformed path (t 0..5) --
    blended = w0 * xin[0:6, :] + w1 * t[0:6, :]                          # [6, N]
    out_ref[...] = jnp.concatenate(
        [blended, jnp.zeros((2, n), jnp.float32)], axis=0)               # one full-tile store


# ---------------------------------------------------------------------------
# Wrapper
# ---------------------------------------------------------------------------
@jax.jit
def deformation_field_forward(pts, pts_view, inv_trans, vol):
    """pts, pts_view: [B, N, 3]; inv_trans: [B, 4, 3]; vol: [1, 2, R, R, R]."""
    f32 = jnp.float32
    bsz, npts, _ = pts.shape

    # layout plumbing: channel-first so the lane axis is the point count.
    pts_cf = jnp.transpose(pts, (0, 2, 1)).astype(f32)                   # [B,3,N]
    view_cf = jnp.transpose(pts_view, (0, 2, 1)).astype(f32)             # [B,3,N]
    xin = jnp.concatenate(
        [pts_cf, view_cf,
         jnp.ones((bsz, 1, npts), f32), jnp.zeros((bsz, 1, npts), f32)],
        axis=1)                                                          # [B,8,N]

    # ---- per-batch combined affine matrix A [B, 16, 8] -----------------------
    half = 0.5 * (R - 1.0)
    scales = jnp.asarray(WARP_SCALES, f32)
    trans = jnp.asarray(WARP_TRANS, f32)
    ws = scales * half                         # coord = ws * p + wcst (pre-clip)
    wcst = (trans * scales + 1.0) * half

    Rm = inv_trans[:, :3, :].astype(f32)       # [B,3,3]  (row-vector convention)
    tr = inv_trans[:, 3, :].astype(f32)        # [B,3]    translation
    RmT = jnp.transpose(Rm, (0, 2, 1))         # A[j,k] = Rm[k,j]
    tRm = jnp.einsum('bk,bkj->bj', tr, Rm)     # t @ Rm

    A = jnp.zeros((bsz, 16, 8), f32)
    A = A.at[:, 0:3, 0:3].set(RmT)             # p1 rotation part
    A = A.at[:, 0:3, 6].set(tRm)               # p1 translation (via constant-1 row)
    A = A.at[:, 3:6, 3:6].set(RmT)             # v1
    A = A.at[:, 6, 0].set(ws[0])
    A = A.at[:, 6, 6].set(wcst[0])
    A = A.at[:, 7, 1].set(ws[1])
    A = A.at[:, 7, 6].set(wcst[1])
    A = A.at[:, 8, 2].set(ws[2])
    A = A.at[:, 8, 6].set(wcst[2])             # c0 = ws*p + wcst
    A = A.at[:, 9:12, :].set(A[:, 0:3, :] * ws[None, :, None])
    A = A.at[:, 9:12, 6].add(wcst[None, :])    # c1 = ws*p1 + wcst

    # ---- block-diagonal weight volume [2*RR, 2*R] (rows z*R+y, cols x) -------
    vol2 = vol[0].reshape(2, RR, R).astype(f32)
    vol_bd = jnp.zeros((2 * RR, 2 * R), f32)
    vol_bd = vol_bd.at[0:RR, 0:R].set(vol2[0])
    vol_bd = vol_bd.at[RR:, R:].set(vol2[1])

    out = pl.pallas_call(
        deformation_kernel,
        out_shape=jax.ShapeDtypeStruct((bsz, 8, npts), f32),
        grid=(bsz,),
        in_specs=[
            pl.BlockSpec((None, 8, npts), lambda i: (i, 0, 0)),          # packed pts/view
            pl.BlockSpec((None, 16, 8), lambda i: (i, 0, 0)),            # affine matrix
            pl.BlockSpec((2 * RR, 2 * R), lambda i: (0, 0)),             # block-diag volume
        ],
        out_specs=pl.BlockSpec((None, 8, npts), lambda i: (i, 0, 0)),
        compiler_params=pltpu.CompilerParams(
            dimension_semantics=("parallel",)),
    )(xin, A, vol_bd)

    out_pts = jnp.transpose(out[:, 0:3, :], (0, 2, 1))
    out_view = jnp.transpose(out[:, 3:6, :], (0, 2, 1))
    return out_pts, out_view


# ---------------------------------------------------------------------------
# Pure-JAX reference (mirrors the PyTorch forward) for correctness checking
# ---------------------------------------------------------------------------
def _trilinear_ref(vol3d, xyz):
    # vol3d: [D, H, W]; xyz: [..., 3] with (x, y, z) -> (W, H, D)
    coord = jnp.clip((xyz + 1.0) * 0.5 * (R - 1.0), 0.0, R - 1.0)
    x, y, z = coord[..., 0], coord[..., 1], coord[..., 2]
    x0 = jnp.floor(x).astype(jnp.int32)
    y0 = jnp.floor(y).astype(jnp.int32)
    z0 = jnp.floor(z).astype(jnp.int32)
    x1 = jnp.minimum(x0 + 1, R - 1)
    y1 = jnp.minimum(y0 + 1, R - 1)
    z1 = jnp.minimum(z0 + 1, R - 1)
    wx, wy, wz = x - x0, y - y0, z - z0

    def g(zi, yi, xi):
        return vol3d[zi, yi, xi]

    v = (g(z0, y0, x0) * (1 - wx) * (1 - wy) * (1 - wz)
         + g(z0, y0, x1) * wx * (1 - wy) * (1 - wz)
         + g(z0, y1, x0) * (1 - wx) * wy * (1 - wz)
         + g(z0, y1, x1) * wx * wy * (1 - wz)
         + g(z1, y0, x0) * (1 - wx) * (1 - wy) * wz
         + g(z1, y0, x1) * wx * (1 - wy) * wz
         + g(z1, y1, x0) * (1 - wx) * wy * wz
         + g(z1, y1, x1) * wx * wy * wz)
    return v[..., None]


def deformation_field_ref(pts, pts_view, inv_trans, vol):
    bsz = pts.shape[0]
    ident = jnp.concatenate([jnp.eye(3, dtype=jnp.float32),
                             jnp.zeros((1, 3), jnp.float32)], axis=0)  # [4, 3]
    inv_ls = [jnp.broadcast_to(ident[None], (bsz, 4, 3)), inv_trans]
    trans = jnp.asarray(WARP_TRANS, jnp.float32)
    scales = jnp.asarray(WARP_SCALES, jnp.float32)

    pts_inv_ls, wc_ls, view_ls = [], [], []
    for i, inv_t in enumerate(inv_ls):
        pts_inv = jnp.matmul(pts + inv_t[:, 3:4, :], inv_t[:, :3, :])
        pts_inv_ls.append(pts_inv)
        xyz = (pts_inv + trans) * scales
        wc_ls.append(_trilinear_ref(vol[0, i], xyz))                 # [B, N, 1]
        view_ls.append(jnp.matmul(pts_view, inv_t[:, :3, :]))
    wc = jnp.concatenate(wc_ls, axis=-1)
    w = wc / (wc.sum(-1, keepdims=True) + 1e-8)
    out_pts = w[..., 0:1] * pts_inv_ls[0] + w[..., 1:2] * pts_inv_ls[1]
    out_view = w[..., 0:1] * view_ls[0] + w[..., 1:2] * view_ls[1]
    return out_pts, out_view


# ---------------------------------------------------------------------------
if __name__ == "__main__":
    key = jax.random.PRNGKey(0)
    k_pts, k_view, k_rot, k_trs, k_vol = jax.random.split(key, 5)

    pts = jax.random.uniform(k_pts, (B, N, 3), jnp.float32, -1.5, 1.5)
    pts_view = jax.random.normal(k_view, (B, N, 3), jnp.float32)

    # inv_Trans: [B, 4, 3] -> rows 0..2 rotation-ish, row 3 translation
    rot = jnp.eye(3, dtype=jnp.float32)[None] + \
        0.1 * jax.random.normal(k_rot, (B, 3, 3), jnp.float32)
    trs = 0.2 * jax.random.normal(k_trs, (B, 1, 3), jnp.float32)
    inv_trans = jnp.concatenate([rot, trs], axis=1)

    # synthetic canonical weight volume (VolumeDecoder output), values in (0, 1)
    vol = jax.nn.sigmoid(jax.random.normal(k_vol, (1, 2, R, R, R), jnp.float32))

    out_pts, out_view = deformation_field_forward(pts, pts_view, inv_trans, vol)
    jax.block_until_ready((out_pts, out_view))

    ref_pts, ref_view = deformation_field_ref(pts, pts_view, inv_trans, vol)
    np.testing.assert_allclose(np.asarray(out_pts), np.asarray(ref_pts),
                               rtol=1e-4, atol=1e-5)
    np.testing.assert_allclose(np.asarray(out_view), np.asarray(ref_view),
                               rtol=1e-4, atol=1e-5)
    print("KERNEL_OK")
</pallas_src>

<mosaic_0001>
module attributes {stable_mosaic.version = 11 : i64} {
  func.func @deformation_kernel(%arg0: i32, %arg1: memref<1x8x256xf32, #tpu.memory_space<vmem>>, %arg2: memref<1x16x8xf32, #tpu.memory_space<vmem>>, %arg3: memref<128x16xf32, #tpu.memory_space<vmem>>, %arg4: memref<1x8x256xf32, #tpu.memory_space<vmem>>) attributes {dimension_semantics = [#tpu.dimension_semantics<parallel>], iteration_bounds = array<i64: 2>, scalar_prefetch = 0 : i64, scratch_operands = 0 : i64, tpu.core_type = #tpu.core_type<tc>, window_params = [{transform_indices = @transform_0, window_bounds = array<i64: 1, 8, 256>}, {transform_indices = @transform_1, window_bounds = array<i64: 1, 16, 8>}, {pipeline_mode = #tpu.pipeline_mode<synchronous>, transform_indices = @transform_2, window_bounds = array<i64: 128, 16>}, {transform_indices = @transform_3, window_bounds = array<i64: 1, 8, 256>}]} {
    %c0 = arith.constant 0 : index
    %c0_0 = arith.constant 0 : index
    %c0_1 = arith.constant 0 : index
    %0 = vector.load %arg1[%c0, %c0_0, %c0_1] : memref<1x8x256xf32, #tpu.memory_space<vmem>>, vector<1x8x256xf32>
    %1 = vector.shape_cast %0 : vector<1x8x256xf32> to vector<8x256xf32>
    %c0_2 = arith.constant 0 : index
    %c0_3 = arith.constant 0 : index
    %c0_4 = arith.constant 0 : index
    %2 = vector.load %arg2[%c0_2, %c0_3, %c0_4] : memref<1x16x8xf32, #tpu.memory_space<vmem>>, vector<1x16x8xf32>
    %3 = vector.shape_cast %2 : vector<1x16x8xf32> to vector<16x8xf32>
    %cst = arith.constant dense<0.000000e+00> : vector<16x256xf32>
    %4 = tpu.matmul %3, %1, %cst {dimension_numbers = #tpu.dot_dimension_numbers<[1], [0], [0], [1], [0, 0, 1, 1], [], []>} : vector<16x8xf32>, vector<8x256xf32>, vector<16x256xf32> -> vector<16x256xf32>
    %5 = vector.extract_strided_slice %4 {offsets = [6, 0], sizes = [6, 256], strides = [1, 1]} : vector<16x256xf32> to vector<6x256xf32>
    %cst_5 = arith.constant 0.000000e+00 : f32
    %cst_6 = arith.constant 7.000000e+00 : f32
    %6 = vector.broadcast %cst_5 : f32 to vector<6x256xf32>
    %7 = arith.maximumf %6, %5 : vector<6x256xf32>
    %8 = vector.broadcast %cst_6 : f32 to vector<6x256xf32>
    %9 = arith.minimumf %8, %7 : vector<6x256xf32>
    %10 = math.floor %9 : vector<6x256xf32>
    %11 = arith.subf %9, %10 : vector<6x256xf32>
    %12 = arith.fptosi %10 : vector<6x256xf32> to vector<6x256xi32>
    %c1_i32 = arith.constant 1 : i32
    %13 = vector.broadcast %c1_i32 : i32 to vector<6x256xi32>
    %14 = arith.addi %12, %13 : vector<6x256xi32>
    %c7_i32 = arith.constant 7 : i32
    %15 = vector.broadcast %c7_i32 : i32 to vector<6x256xi32>
    %16 = arith.minsi %14, %15 : vector<6x256xi32>
    %17 = tpu.iota {dimensions = array<i32: 0>} : vector<8x256xi32>
    %18 = vector.extract_strided_slice %12 {offsets = [0, 0], sizes = [1, 256], strides = [1, 1]} : vector<6x256xi32> to vector<1x256xi32>
    %19 = vector.extract_strided_slice %16 {offsets = [0, 0], sizes = [1, 256], strides = [1, 1]} : vector<6x256xi32> to vector<1x256xi32>
    %20 = vector.extract_strided_slice %11 {offsets = [0, 0], sizes = [1, 256], strides = [1, 1]} : vector<6x256xf32> to vector<1x256xf32>
    %21 = vector.broadcast %18 : vector<1x256xi32> to vector<8x256xi32>
    %22 = arith.cmpi eq, %17, %21 : vector<8x256xi32>
    %cst_7 = arith.constant 1.000000e+00 : f32
    %23 = vector.broadcast %cst_7 : f32 to vector<1x256xf32>
    %24 = arith.subf %23, %20 : vector<1x256xf32>
    %cst_8 = arith.constant 0.000000e+00 : f32
    %25 = vector.shape_cast %24 : vector<1x256xf32> to vector<1x256xf32>
    %26 = vector.broadcast %25 : vector<1x256xf32> to vector<8x256xf32>
    %27 = vector.broadcast %cst_8 : f32 to vector<8x256xf32>
    %28 = arith.select %22, %26, %27 : vector<8x256xi1>, vector<8x256xf32>
    %29 = vector.broadcast %19 : vector<1x256xi32> to vector<8x256xi32>
    %30 = arith.cmpi eq, %17, %29 : vector<8x256xi32>
    %cst_9 = arith.constant 0.000000e+00 : f32
    %31 = vector.shape_cast %20 : vector<1x256xf32> to vector<1x256xf32>
    %32 = vector.broadcast %31 : vector<1x256xf32> to vector<8x256xf32>
    %33 = vector.broadcast %cst_9 : f32 to vector<8x256xf32>
    %34 = arith.select %30, %32, %33 : vector<8x256xi1>, vector<8x256xf32>
    %35 = arith.addf %28, %34 : vector<8x256xf32>
    %36 = vector.extract_strided_slice %12 {offsets = [1, 0], sizes = [1, 256], strides = [1, 1]} : vector<6x256xi32> to vector<1x256xi32>
    %37 = vector.extract_strided_slice %16 {offsets = [1, 0], sizes = [1, 256], strides = [1, 1]} : vector<6x256xi32> to vector<1x256xi32>
    %38 = vector.extract_strided_slice %11 {offsets = [1, 0], sizes = [1, 256], strides = [1, 1]} : vector<6x256xf32> to vector<1x256xf32>
    %39 = vector.broadcast %36 : vector<1x256xi32> to vector<8x256xi32>
    %40 = arith.cmpi eq, %17, %39 : vector<8x256xi32>
    %cst_10 = arith.constant 1.000000e+00 : f32
    %41 = vector.broadcast %cst_10 : f32 to vector<1x256xf32>
    %42 = arith.subf %41, %38 : vector<1x256xf32>
    %cst_11 = arith.constant 0.000000e+00 : f32
    %43 = vector.shape_cast %42 : vector<1x256xf32> to vector<1x256xf32>
    %44 = vector.broadcast %43 : vector<1x256xf32> to vector<8x256xf32>
    %45 = vector.broadcast %cst_11 : f32 to vector<8x256xf32>
    %46 = arith.select %40, %44, %45 : vector<8x256xi1>, vector<8x256xf32>
    %47 = vector.broadcast %37 : vector<1x256xi32> to vector<8x256xi32>
    %48 = arith.cmpi eq, %17, %47 : vector<8x256xi32>
    %cst_12 = arith.constant 0.000000e+00 : f32
    %49 = vector.shape_cast %38 : vector<1x256xf32> to vector<1x256xf32>
    %50 = vector.broadcast %49 : vector<1x256xf32> to vector<8x256xf32>
    %51 = vector.broadcast %cst_12 : f32 to vector<8x256xf32>
    %52 = arith.select %48, %50, %51 : vector<8x256xi1>, vector<8x256xf32>
    %53 = arith.addf %46, %52 : vector<8x256xf32>
    %54 = vector.extract_strided_slice %12 {offsets = [2, 0], sizes = [1, 256], strides = [1, 1]} : vector<6x256xi32> to vector<1x256xi32>
    %55 = vector.extract_strided_slice %16 {offsets = [2, 0], sizes = [1, 256], strides = [1, 1]} : vector<6x256xi32> to vector<1x256xi32>
    %56 = vector.extract_strided_slice %11 {offsets = [2, 0], sizes = [1, 256], strides = [1, 1]} : vector<6x256xf32> to vector<1x256xf32>
    %57 = vector.broadcast %54 : vector<1x256xi32> to vector<8x256xi32>
    %58 = arith.cmpi eq, %17, %57 : vector<8x256xi32>
    %cst_13 = arith.constant 1.000000e+00 : f32
    %59 = vector.broadcast %cst_13 : f32 to vector<1x256xf32>
    %60 = arith.subf %59, %56 : vector<1x256xf32>
    %cst_14 = arith.constant 0.000000e+00 : f32
    %61 = vector.shape_cast %60 : vector<1x256xf32> to vector<1x256xf32>
    %62 = vector.broadcast %61 : vector<1x256xf32> to vector<8x256xf32>
    %63 = vector.broadcast %cst_14 : f32 to vector<8x256xf32>
    %64 = arith.select %58, %62, %63 : vector<8x256xi1>, vector<8x256xf32>
    %65 = vector.broadcast %55 : vector<1x256xi32> to vector<8x256xi32>
    %66 = arith.cmpi eq, %17, %65 : vector<8x256xi32>
    %cst_15 = arith.constant 0.000000e+00 : f32
    %67 = vector.shape_cast %56 : vector<1x256xf32> to vector<1x256xf32>
    %68 = vector.broadcast %67 : vector<1x256xf32> to vector<8x256xf32>
    %69 = vector.broadcast %cst_15 : f32 to vector<8x256xf32>
    %70 = arith.select %66, %68, %69 : vector<8x256xi1>, vector<8x256xf32>
    %71 = arith.addf %64, %70 : vector<8x256xf32>
    %72 = vector.extract_strided_slice %12 {offsets = [3, 0], sizes = [1, 256], strides = [1, 1]} : vector<6x256xi32> to vector<1x256xi32>
    %73 = vector.extract_strided_slice %16 {offsets = [3, 0], sizes = [1, 256], strides = [1, 1]} : vector<6x256xi32> to vector<1x256xi32>
    %74 = vector.extract_strided_slice %11 {offsets = [3, 0], sizes = [1, 256], strides = [1, 1]} : vector<6x256xf32> to vector<1x256xf32>
    %75 = vector.broadcast %72 : vector<1x256xi32> to vector<8x256xi32>
    %76 = arith.cmpi eq, %17, %75 : vector<8x256xi32>
    %cst_16 = arith.constant 1.000000e+00 : f32
    %77 = vector.broadcast %cst_16 : f32 to vector<1x256xf32>
    %78 = arith.subf %77, %74 : vector<1x256xf32>
    %cst_17 = arith.constant 0.000000e+00 : f32
    %79 = vector.shape_cast %78 : vector<1x256xf32> to vector<1x256xf32>
    %80 = vector.broadcast %79 : vector<1x256xf32> to vector<8x256xf32>
    %81 = vector.broadcast %cst_17 : f32 to vector<8x256xf32>
    %82 = arith.select %76, %80, %81 : vector<8x256xi1>, vector<8x256xf32>
    %83 = vector.broadcast %73 : vector<1x256xi32> to vector<8x256xi32>
    %84 = arith.cmpi eq, %17, %83 : vector<8x256xi32>
    %cst_18 = arith.constant 0.000000e+00 : f32
    %85 = vector.shape_cast %74 : vector<1x256xf32> to vector<1x256xf32>
    %86 = vector.broadcast %85 : vector<1x256xf32> to vector<8x256xf32>
    %87 = vector.broadcast %cst_18 : f32 to vector<8x256xf32>
    %88 = arith.select %84, %86, %87 : vector<8x256xi1>, vector<8x256xf32>
    %89 = arith.addf %82, %88 : vector<8x256xf32>
    %90 = vector.extract_strided_slice %12 {offsets = [4, 0], sizes = [1, 256], strides = [1, 1]} : vector<6x256xi32> to vector<1x256xi32>
    %91 = vector.extract_strided_slice %16 {offsets = [4, 0], sizes = [1, 256], strides = [1, 1]} : vector<6x256xi32> to vector<1x256xi32>
    %92 = vector.extract_strided_slice %11 {offsets = [4, 0], sizes = [1, 256], strides = [1, 1]} : vector<6x256xf32> to vector<1x256xf32>
    %93 = vector.broadcast %90 : vector<1x256xi32> to vector<8x256xi32>
    %94 = arith.cmpi eq, %17, %93 : vector<8x256xi32>
    %cst_19 = arith.constant 1.000000e+00 : f32
    %95 = vector.broadcast %cst_19 : f32 to vector<1x256xf32>
    %96 = arith.subf %95, %92 : vector<1x256xf32>
    %cst_20 = arith.constant 0.000000e+00 : f32
    %97 = vector.shape_cast %96 : vector<1x256xf32> to vector<1x256xf32>
    %98 = vector.broadcast %97 : vector<1x256xf32> to vector<8x256xf32>
    %99 = vector.broadcast %cst_20 : f32 to vector<8x256xf32>
    %100 = arith.select %94, %98, %99 : vector<8x256xi1>, vector<8x256xf32>
    %101 = vector.broadcast %91 : vector<1x256xi32> to vector<8x256xi32>
    %102 = arith.cmpi eq, %17, %101 : vector<8x256xi32>
    %cst_21 = arith.constant 0.000000e+00 : f32
    %103 = vector.shape_cast %92 : vector<1x256xf32> to vector<1x256xf32>
    %104 = vector.broadcast %103 : vector<1x256xf32> to vector<8x256xf32>
    %105 = vector.broadcast %cst_21 : f32 to vector<8x256xf32>
    %106 = arith.select %102, %104, %105 : vector<8x256xi1>, vector<8x256xf32>
    %107 = arith.addf %100, %106 : vector<8x256xf32>
    %108 = vector.extract_strided_slice %12 {offsets = [5, 0], sizes = [1, 256], strides = [1, 1]} : vector<6x256xi32> to vector<1x256xi32>
    %109 = vector.extract_strided_slice %16 {offsets = [5, 0], sizes = [1, 256], strides = [1, 1]} : vector<6x256xi32> to vector<1x256xi32>
    %110 = vector.extract_strided_slice %11 {offsets = [5, 0], sizes = [1, 256], strides = [1, 1]} : vector<6x256xf32> to vector<1x256xf32>
    %111 = vector.broadcast %108 : vector<1x256xi32> to vector<8x256xi32>
    %112 = arith.cmpi eq, %17, %111 : vector<8x256xi32>
    %cst_22 = arith.constant 1.000000e+00 : f32
    %113 = vector.broadcast %cst_22 : f32 to vector<1x256xf32>
    %114 = arith.subf %113, %110 : vector<1x256xf32>
    %cst_23 = arith.constant 0.000000e+00 : f32
    %115 = vector.shape_cast %114 : vector<1x256xf32> to vector<1x256xf32>
    %116 = vector.broadcast %115 : vector<1x256xf32> to vector<8x256xf32>
    %117 = vector.broadcast %cst_23 : f32 to vector<8x256xf32>
    %118 = arith.select %112, %116, %117 : vector<8x256xi1>, vector<8x256xf32>
    %119 = vector.broadcast %109 : vector<1x256xi32> to vector<8x256xi32>
    %120 = arith.cmpi eq, %17, %119 : vector<8x256xi32>
    %cst_24 = arith.constant 0.000000e+00 : f32
    %121 = vector.shape_cast %110 : vector<1x256xf32> to vector<1x256xf32>
    %122 = vector.broadcast %121 : vector<1x256xf32> to vector<8x256xf32>
    %123 = vector.broadcast %cst_24 : f32 to vector<8x256xf32>
    %124 = arith.select %120, %122, %123 : vector<8x256xi1>, vector<8x256xf32>
    %125 = arith.addf %118, %124 : vector<8x256xf32>
    %126 = tpu.concatenate %35, %89 in 0 : vector<8x256xf32>, vector<8x256xf32> -> vector<16x256xf32>
    %c0_25 = arith.constant 0 : index
    %c0_26 = arith.constant 0 : index
    %127 = vector.load %arg3[%c0_25, %c0_26] : memref<128x16xf32, #tpu.memory_space<vmem>>, vector<128x16xf32>
    %cst_27 = arith.constant dense<0.000000e+00> : vector<128x256xf32>
    %128 = tpu.matmul %127, %126, %cst_27 {dimension_numbers = #tpu.dot_dimension_numbers<[1], [0], [0], [1], [0, 0, 1, 1], [], []>} : vector<128x16xf32>, vector<16x256xf32>, vector<128x256xf32> -> vector<128x256xf32>
    %129 = vector.extract_strided_slice %128 {offsets = [0, 0], sizes = [64, 256], strides = [1, 1]} : vector<128x256xf32> to vector<64x256xf32>
    %130 = vector.shape_cast %129 : vector<64x256xf32> to vector<8x8x256xf32>
    %131 = vector.shape_cast %53 : vector<8x256xf32> to vector<1x8x256xf32>
    %132 = vector.broadcast %131 : vector<1x8x256xf32> to vector<8x8x256xf32>
    %133 = arith.mulf %130, %132 : vector<8x8x256xf32>
    %cst_28 = arith.constant dense<0.000000e+00> : vector<8x256xf32>
    %134 = vector.multi_reduction <add>, %133, %cst_28 [1] : vector<8x8x256xf32> to vector<8x256xf32>
    %135 = arith.mulf %134, %71 : vector<8x256xf32>
    %cst_29 = arith.constant dense<0.000000e+00> : vector<256xf32>
    %136 = vector.multi_reduction <add>, %135, %cst_29 [0] : vector<8x256xf32> to vector<256xf32>
    %137 = vector.shape_cast %136 : vector<256xf32> to vector<1x256xf32>
    %138 = vector.extract_strided_slice %128 {offsets = [64, 0], sizes = [64, 256], strides = [1, 1]} : vector<128x256xf32> to vector<64x256xf32>
    %139 = vector.shape_cast %138 : vector<64x256xf32> to vector<8x8x256xf32>
    %140 = vector.shape_cast %107 : vector<8x256xf32> to vector<1x8x256xf32>
    %141 = vector.broadcast %140 : vector<1x8x256xf32> to vector<8x8x256xf32>
    %142 = arith.mulf %139, %141 : vector<8x8x256xf32>
    %cst_30 = arith.constant dense<0.000000e+00> : vector<8x256xf32>
    %143 = vector.multi_reduction <add>, %142, %cst_30 [1] : vector<8x8x256xf32> to vector<8x256xf32>
    %144 = arith.mulf %143, %125 : vector<8x256xf32>
    %cst_31 = arith.constant dense<0.000000e+00> : vector<256xf32>
    %145 = vector.multi_reduction <add>, %144, %cst_31 [0] : vector<8x256xf32> to vector<256xf32>
    %146 = vector.shape_cast %145 : vector<256xf32> to vector<1x256xf32>
    %147 = arith.addf %137, %146 : vector<1x256xf32>
    %cst_32 = arith.constant 9.99999993E-9 : f32
    %148 = vector.broadcast %cst_32 : f32 to vector<1x256xf32>
    %149 = arith.addf %147, %148 : vector<1x256xf32>
    %150 = tpu.reciprocal %149 {approx = true} : vector<1x256xf32> -> vector<1x256xf32>
    %151 = arith.mulf %149, %150 : vector<1x256xf32>
    %cst_33 = arith.constant 2.000000e+00 : f32
    %152 = vector.broadcast %cst_33 : f32 to vector<1x256xf32>
    %153 = arith.subf %152, %151 : vector<1x256xf32>
    %154 = arith.mulf %150, %153 : vector<1x256xf32>
    %155 = arith.mulf %137, %154 : vector<1x256xf32>
    %156 = arith.mulf %146, %154 : vector<1x256xf32>
    %157 = vector.extract_strided_slice %1 {offsets = [0, 0], sizes = [6, 256], strides = [1, 1]} : vector<8x256xf32> to vector<6x256xf32>
    %158 = vector.broadcast %155 : vector<1x256xf32> to vector<6x256xf32>
    %159 = arith.mulf %158, %157 : vector<6x256xf32>
    %160 = vector.extract_strided_slice %4 {offsets = [0, 0], sizes = [6, 256], strides = [1, 1]} : vector<16x256xf32> to vector<6x256xf32>
    %161 = vector.broadcast %156 : vector<1x256xf32> to vector<6x256xf32>
    %162 = arith.mulf %161, %160 : vector<6x256xf32>
    %163 = arith.addf %159, %162 : vector<6x256xf32>
    %cst_34 = arith.constant 0.000000e+00 : f32
    %164 = vector.broadcast %cst_34 : f32 to vector<2x256xf32>
    %165 = tpu.concatenate %163, %164 in 0 : vector<6x256xf32>, vector<2x256xf32> -> vector<8x256xf32>
    %c0_35 = arith.constant 0 : index
    %c0_36 = arith.constant 0 : index
    %c0_37 = arith.constant 0 : index
    %166 = vector.load %arg4[%c0_35, %c0_36, %c0_37] : memref<1x8x256xf32, #tpu.memory_space<vmem>>, vector<1x8x256xf32>
    %167 = vector.shape_cast %166 : vector<1x8x256xf32> to vector<8x256xf32>
    %168 = vector.shape_cast %165 : vector<8x256xf32> to vector<1x8x256xf32>
    tpu.vector_store %arg4[%c0_35, %c0_36, %c0_37], %168 {strides = array<i32>} : memref<1x8x256xf32, #tpu.memory_space<vmem>>, vector<1x8x256xf32>,
    return
  }
  func.func @transform_0(%arg0: i32) -> (i32, i32, i32) {
    %c0_i32 = arith.constant 0 : i32
    %c0_i32_0 = arith.constant 0 : i32
    %c0_i32_1 = arith.constant 0 : i32
    return %arg0, %c0_i32, %c0_i32_0 : i32, i32, i32
  }
  func.func @transform_1(%arg0: i32) -> (i32, i32, i32) {
    %c0_i32 = arith.constant 0 : i32
    %c0_i32_0 = arith.constant 0 : i32
    %c0_i32_1 = arith.constant 0 : i32
    return %arg0, %c0_i32, %c0_i32_0 : i32, i32, i32
  }
  func.func @transform_2(%arg0: i32) -> (i32, i32) {
    %c0_i32 = arith.constant 0 : i32
    %c0_i32_0 = arith.constant 0 : i32
    %c0_i32_1 = arith.constant 0 : i32
    return %c0_i32, %c0_i32_0 : i32, i32
  }
  func.func @transform_3(%arg0: i32) -> (i32, i32, i32) {
    %c0_i32 = arith.constant 0 : i32
    %c0_i32_0 = arith.constant 0 : i32
    %c0_i32_1 = arith.constant 0 : i32
    return %arg0, %c0_i32, %c0_i32_0 : i32, i32, i32
  }
}

</mosaic_0001>

<bundles_post_ra>
// kernel: deformation_field_forward.1
= control target key start
LH: loop header
LB: loop body
LE: loop exit
PB: predicated region body
PF: predicated region fallthrough
CT: control target
= control target key end

     0   :  { %s1236_s12 = smov 0   ;;  %s1671_s0 = inlined_call_operand.vmem [shape: f32[2,8,256], index: 0, kind: input, shape index: {}]   ;;  %s1672_s1 = inlined_call_operand.vmem [shape: f32[2,16,8], index: 1, kind: input, shape index: {}]   ;;  %s1673_s2 = inlined_call_operand.vmem [shape: f32[128,16], index: 2, kind: input, shape index: {}]   ;;  %s1674_s3 = inlined_call_operand.vmem [shape: f32[2,8,256], index: 3, kind: output, shape index: {}]  }
   0x1 LB: > { %s1130_s13 = sadd.s32 4294967295, %s1214_s12   ;;  %p1134_p0 = scmp.ge.s32.totalorder %s1214_s12, 1  ;;  %s1214_s12 = sphi %s1236_s12, %s13_s12  }
   0x2   : > { %p147_p1 = scmp.lt.s32.totalorder %s1214_s12, 3 }
   0x4   : > { %p148_p2 = pnand %p1134_p0, %p147_p1 }
   0x5   : > { %p176_p3 = scmp.lt.s32.totalorder (!%p148_p2), %s1130_s13, 1 }
   0x6   : > { %151 = sbr.rel (%p148_p2) target bundleno = 442 (0x1ba), region = 32 }
   0xb   : > { %s1694_s13 = smov (!%p176_p3, %s1130_s13), 1  ;;  %vm195_vm0 = vcmask 64512   ;;  %v280_v10 = vlaneseq  ;;  %v394_v27 = vld [vmem:[%s1673_s2] sm:$0xff] }
   0xc   : > { %s1244_s14 = sshll.u32 %s1694_s13, 4 }
   0xd   : > { %s1250_s17 = scalar_lea.vmem %s1671_s0, %s1244_s14  ;;  %s185_s20 = scalar_lea.vmem %s1672_s1, %s1244_s14  ;;  %v1268_v16 = vshrl.u32 %v280_v10, 7 }
   0xe   : > { %v191_v0 = vld [vmem:[%s1250_s17] sm:$0xff]  ;;  %v192_v1 = vld [vmem:[%s1250_s17 + $0x8] sm:$0xff]  ;;  %s190_s4 = scalar_lea.vmem %s1674_s3, %s1244_s14 }
   0xf   : > { %217 = vmatpush.msra.mxu0 %v191_v0  ;;  %240 = vmatpush.msra.mxu1 %v192_v1  ;;  %v193_v2 = vld [vmem:[%s185_s20] sm:$0xff]  ;;  %v194_v3 = vld [vmem:[%s185_s20 + $0x8] sm:$0xff] }
  0x10   : > { %1141 = vmatmul.msk.f32.vlgmr.msra.gmra.mxu0 %vm195_vm0, %v193_v2  ;;  %1143 = vmatmul.msk.f32.vlgmr.msra.gmra.mxu1 %vm195_vm0, %v193_v2 }
  0x18   : > { %1142 = vmatmul.msk.f32.gmra.mxu0 %vm195_vm0, %v194_v3  ;;  %1144 = vmatmul.msk.f32.gmra.mxu1 %vm195_vm0, %v194_v3 }
  0x8d   : > { %v1258_v4 = vpop.f32.mrf.mxu0  ;;  %v1260_v5 = vpop.f32.mrf.mxu1 }
  0x8e   : > { %v248_v6 = vmax.f32 %v1258_v4, 0.0  ;;  %v249_v7 = vmax.f32 %v1260_v5, 0.0 }
  0x90   : > { %v252_v8 = vmin.f32 %v248_v6, 7.0  ;;  %v253_v9 = vmin.f32 %v249_v7, 7.0 }
  0x92   : > { %v256_v11 = vfloor.f32 %v252_v8  ;;  %v257_v12 = vfloor.f32 %v253_v9 }
  0x94   : > { %v1264_v13 = vsub.f32 %v252_v8, %v256_v11  ;;  %v1187_v14 = vcvt.f32.s32 %v256_v11  ;;  %v1266_v15 = vcvt.f32.s32 %v257_v12  ;;  %v1270_v20 = vsub.f32 %v253_v9, %v257_v12 }
  0x95   : > { %v222_v17 = vpop.f32.mrf.mxu0  ;;  %v245_v18 = vpop.f32.mrf.mxu1 }
  0x96   : > { %v302_v19 = vperm.slane %v1187_v14, 7  ;;  %v250_v21 = vmax.f32 %v222_v17, 0.0  ;;  %v251_v22 = vmax.f32 %v245_v18, 0.0  ;;  %v268_v23 = vadd.s32 1, %v1187_v14 }
  0x97   : > { %v282_v24 = vperm.slane %v1187_v14, 6  ;;  %v314_v25 = vperm.slane %v1264_v13, 7  ;;  %v286_v26 = vsub.f32 1.0, %v1264_v13  ;;  %v269_v28 = vadd.s32 1, %v1266_v15 }
  0x98   : > { %vm1275_vm1 = vcmp.eq.s32.totalorder %v1268_v16, %v302_v19  ;;  %v254_v29 = vmin.f32 %v250_v21, 7.0  ;;  %v255_v30 = vmin.f32 %v251_v22, 7.0  ;;  %vm272_vm2 = vcmp.lt.s32.totalorder %v268_v23, 7  ;;  %v397_v21 = vld [vmem:[%s1673_s2 + $0x18] sm:$0xff] }
  0x99   : > { %vm1281_vm3 = vcmp.eq.s32.totalorder %v1268_v16, %v282_v24  ;;  %v303_v32 = vperm.slane %v1266_v15, 7  ;;  %v273_v33 = vsel %vm272_vm2, %v268_v23, 7  ;;  %v1286_v34 = vperm.slane %v286_v26, 6 }
  0x9a   : > { %v1288_v35 = vperm.slane %v286_v26, 7  ;;  %v258_v36 = vfloor.f32 %v254_v29  ;;  %v259_v37 = vfloor.f32 %v255_v30  ;;  %v310_v38 = vperm.slane %v273_v33, 7 }
  0x9b   : > { %vm274_vm4 = vcmp.lt.s32.totalorder %v269_v28, 7  ;;  %v290_v39 = vsel %vm1281_vm3, %v1286_v34, 0.0  ;;  %v292_v40 = vperm.slane %v273_v33, 6  ;;  %v296_v41 = vperm.slane %v1264_v13, 6 }
  0x9c   : > { %v308_v42 = vsel %vm1275_vm1, %v1288_v35, 0.0  ;;  %v262_v43 = vsub.f32 %v254_v29, %v258_v36  ;;  %v1191_v44 = vcvt.f32.s32 %v258_v36  ;;  %v1297_v45 = vsub.f32 %v255_v30, %v259_v37  ;;  %v401_v35 = vld [vmem:[%s1673_s2 + $0x38] sm:$0xff]  ;;  %v400_v29 = vld [vmem:[%s1673_s2 + $0x30] sm:$0xff] }
  0x9d   : > { %v1299_v46 = vcvt.f32.s32 %v259_v37  ;;  %vm1302_vm5 = vcmp.eq.s32.totalorder %v1268_v16, %v310_v38  ;;  %v1306_v48 = vsel %vm274_vm4, %v269_v28, 7  ;;  %v283_v49 = vperm.slane %v1266_v15, 6 }
  0x9e   : > { %v287_v50 = vsub.f32 1.0, %v1270_v20  ;;  %v320_v51 = vperm.slane %v1191_v44, 0  ;;  %v334_v52 = vperm.slane %v262_v43, 0  ;;  %v358_v53 = vperm.slane %v1191_v44, 2 }
  0x9f   : > { %v370_v54 = vperm.slane %v262_v43, 2  ;;  %v376_v55 = vperm.slane %v1191_v44, 3  ;;  %v388_v56 = vperm.slane %v262_v43, 3  ;;  %v321_v57 = vperm.slane %v1299_v46, 0 }
  0xa0   : > { %v335_v58 = vperm.slane %v1297_v45, 0  ;;  %v359_v59 = vperm.slane %v1299_v46, 2  ;;  %v371_v60 = vperm.slane %v1297_v45, 2  ;;  %v377_v61 = vperm.slane %v1299_v46, 3 }
  0xa1   : > { %v389_v62 = vperm.slane %v1297_v45, 3  ;;  %v270_v63 = vadd.s32 1, %v1191_v44  ;;  %vm322_vm6 = vcmp.eq.s32.totalorder %v1268_v16, %v320_v51  ;;  %v324_v0 = vsub.f32 1.0, %v262_v43 }
  0xa2   : > { %v340_v1 = vperm.slane %v1191_v44, 1  ;;  %v352_v2 = vperm.slane %v262_v43, 1  ;;  %vm1318_vm7 = vcmp.eq.s32.totalorder %v1268_v16, %v358_v53  ;;  %vm1323_vm8 = vcmp.eq.s32.totalorder %v1268_v16, %v376_v55 }
  0xa3   : > { %v271_v7 = vadd.s32 1, %v1299_v46  ;;  %vm276_vm9 = vcmp.lt.s32.totalorder %v270_v63, 7  ;;  %v326_v8 = vperm.slane %v324_v0, 0  ;;  %v344_v9 = vperm.slane %v324_v0, 1 }
  0xa4   : > { %vm342_vm10 = vcmp.eq.s32.totalorder %v1268_v16, %v340_v1  ;;  %v277_v10 = vsel %vm276_vm9, %v270_v63, 7  ;;  %v362_v11 = vperm.slane %v324_v0, 2  ;;  %v380_v12 = vperm.slane %v324_v0, 3 }
  0xa5   : > { %vm278_vm11 = vcmp.lt.s32.totalorder %v271_v7, 7  ;;  %v328_v14 = vsel %vm322_vm6, %v326_v8, 0.0  ;;  %v330_v17 = vperm.slane %v277_v10, 0  ;;  %v346_v18 = vsel %vm342_vm10, %v344_v9, 0.0 }
  0xa6   : > { %v348_v19 = vperm.slane %v277_v10, 1  ;;  %vm1330_vm12 = vcmp.eq.s32.totalorder %v1268_v16, %v292_v40  ;;  %v364_v22 = vsel %vm1318_vm7, %v362_v11, 0.0  ;;  %v366_v23 = vperm.slane %v277_v10, 2 }
  0xa7   : > { %v382_v24 = vsel %vm1323_vm8, %v380_v12, 0.0  ;;  %v384_v26 = vperm.slane %v277_v10, 3  ;;  %vm332_vm13 = vcmp.eq.s32.totalorder %v1268_v16, %v330_v17  ;;  %v279_v28 = vsel %vm278_vm11, %v271_v7, 7 }
  0xa8   : > { %vm350_vm14 = vcmp.eq.s32.totalorder %v1268_v16, %v348_v19  ;;  %vm1341_vm15 = vcmp.eq.s32.totalorder %v1268_v16, %v321_v57  ;;  %v336_v30 = vsel %vm332_vm13, %v334_v52, 0.0  ;;  %vm368_vm0 = vcmp.eq.s32.totalorder %v1268_v16, %v366_v23  ;;  %v403_v19 = vld [vmem:[%s1673_s2 + $0x48] sm:$0xff]  ;;  %v398_v23 = vld [vmem:[%s1673_s2 + $0x20] sm:$0xff] }
  0xa9   : > { %v354_v33 = vsel %vm350_vm14, %v352_v2, 0.0  ;;  %vm386_vm2 = vcmp.eq.s32.totalorder %v1268_v16, %v384_v26  ;;  %v1347_v36 = vadd.f32 %v336_v30, %v328_v14  ;;  %v372_v38 = vsel %vm368_vm0, %v370_v54, 0.0  ;;  %v399_v26 = vld [vmem:[%s1673_s2 + $0x28] sm:$0xff] }
  0xaa   : > { %v356_v37 = vadd.f32 %v354_v33, %v346_v18  ;;  %v390_v40 = vsel %vm386_vm2, %v388_v56, 0.0  ;;  %v1349_v43 = vadd.f32 %v372_v38, %v364_v22  ;;  %v325_v51 = vsub.f32 1.0, %v1297_v45  ;;  %v404_v22 = vld [vmem:[%s1673_s2 + $0x50] sm:$0xff]  ;;  %v407_v30 = vld [vmem:[%s1673_s2 + $0x68] sm:$0xff] }
  0xab   : > { %v1351_v44 = vadd.f32 %v390_v40, %v382_v24  ;;  %v331_v53 = vperm.slane %v279_v28, 0  ;;  %vm1355_vm4 = vcmp.eq.s32.totalorder %v1268_v16, %v283_v49  ;;  %v341_v55 = vperm.slane %v1299_v46, 1  ;;  %v405_v24 = vld [vmem:[%s1673_s2 + $0x58] sm:$0xff]  ;;  %v408_v33 = vld [vmem:[%s1673_s2 + $0x70] sm:$0xff] }
  0xac   : > { %473 = vmatpush.msrb.mxu0 %v356_v37  ;;  %1182 = vmatpush.msra.mxu2 %v356_v37  ;;  %v349_v57 = vperm.slane %v279_v28, 1  ;;  %v353_v54 = vperm.slane %v1297_v45, 1  ;;  %vm361_vm6 = vcmp.eq.s32.totalorder %v1268_v16, %v359_v59  ;;  %v327_v56 = vperm.slane %v325_v51, 0  ;;  %v409_v37 = vld [vmem:[%s1673_s2 + $0x78] sm:$0xff] }
  0xad   : > { %vm333_vm7 = vcmp.eq.s32.totalorder %v1268_v16, %v331_v53  ;;  %v345_v63 = vperm.slane %v325_v51, 1  ;;  %v363_v0 = vperm.slane %v325_v51, 2  ;;  %vm343_vm8 = vcmp.eq.s32.totalorder %v1268_v16, %v341_v55 }
  0xae   : > { %v337_v1 = vsel %vm333_vm7, %v335_v58, 0.0  ;;  %vm351_vm9 = vcmp.eq.s32.totalorder %v1268_v16, %v349_v57  ;;  %v367_v49 = vperm.slane %v279_v28, 2  ;;  %v329_v2 = vsel %vm1341_vm15, %v327_v56, 0.0 }
  0xaf   : > { %v347_v3 = vsel %vm343_vm8, %v345_v63, 0.0  ;;  %v355_v6 = vsel %vm351_vm9, %v353_v54, 0.0  ;;  %v365_v7 = vsel %vm361_vm6, %v363_v0, 0.0  ;;  %v1367_v8 = vadd.f32 %v337_v1, %v329_v2 }
  0xb0   : > { %v357_v59 = vadd.f32 %v355_v6, %v347_v3  ;;  %vm369_vm10 = vcmp.eq.s32.totalorder %v1268_v16, %v367_v49  ;;  %vm379_vm11 = vcmp.eq.s32.totalorder %v1268_v16, %v377_v61  ;;  %v381_v9 = vperm.slane %v325_v51, 3 }
  0xb1   : > { %v373_v58 = vsel %vm369_vm10, %v371_v60, 0.0  ;;  %v385_v10 = vperm.slane %v279_v28, 3  ;;  %v298_v11 = vsel %vm1330_vm12, %v296_v41, 0.0  ;;  %v316_v60 = vsel %vm1302_vm5, %v314_v25, 0.0  ;;  %v406_v28 = vld [vmem:[%s1673_s2 + $0x60] sm:$0xff] }
  0xb2   : > { %v1379_v12 = vadd.f32 %v373_v58, %v365_v7  ;;  %538 = vmatpush.msrb.mxu1 %v357_v59  ;;  %1184 = vmatpush.msra.mxu3 %v357_v59  ;;  %v300_v46 = vadd.f32 %v298_v11, %v290_v39  ;;  %v289_v61 = vperm.slane %v287_v50, 6  ;;  %v383_v14 = vsel %vm379_vm11, %v381_v9, 0.0 }
  0xb3   : > { %vm387_vm12 = vcmp.eq.s32.totalorder %v1268_v16, %v385_v10  ;;  %v1396_v41 = vadd.f32 %v316_v60, %v308_v42  ;;  %v293_v31 = vperm.slane %v1306_v48, 6  ;;  %v297_v25 = vperm.slane %v1270_v20, 6 }
  0xb4   : > { %v391_v13 = vsel %vm387_vm12, %v389_v62, 0.0  ;;  %474 = vmatpush.msrb.mxu0 %v300_v46  ;;  %1183 = vmatpush.msra.mxu2 %v300_v46  ;;  %vm1405_vm3 = vcmp.eq.s32.totalorder %v1268_v16, %v303_v32  ;;  %v307_v15 = vperm.slane %v287_v50, 7  ;;  %v311_v32 = vperm.slane %v1306_v48, 7  ;;  %v396_v48 = vld [vmem:[%s1673_s2 + $0x10] sm:$0xff] }
  0xb5   : > { %v1415_v39 = vadd.f32 %v391_v13, %v383_v14  ;;  %vm295_vm1 = vcmp.eq.s32.totalorder %v1268_v16, %v293_v31  ;;  %v315_v42 = vperm.slane %v1270_v20, 7  ;;  %v291_v45 = vsel %vm1355_vm4, %v289_v61, 0.0  ;;  %v395_v20 = vld [vmem:[%s1673_s2 + $0x8] sm:$0xff] }
  0xb6   : > { %v299_v47 = vsel %vm295_vm1, %v297_v25, 0.0  ;;  %vm410_vm5 = vcmask 130048   ;;  %v309_v17 = vsel %vm1405_vm3, %v307_v15, 0.0  ;;  %vm313_vm13 = vcmp.eq.s32.totalorder %v1268_v16, %v311_v32  ;;  %v402_v16 = vld [vmem:[%s1673_s2 + $0x40] sm:$0xff] }
  0xb7   : > { %v301_v62 = vadd.f32 %v299_v47, %v291_v45  ;;  %1145 = vmatmul.msk.f32.vlgmr.msrb.gmra.mxu0 %vm410_vm5, %v394_v27  ;;  %1152 = vmatmul.msk.f32.vlgmr.msra.gmra.mxu2 %vm410_vm5, %v401_v35  ;;  %v317_v50 = vsel %vm313_vm13, %v315_v42, 0.0  ;;  %v715_v52 = vrot.slane %v1347_v36, 7  ;;  %v716_v55 = vrot.slane %v1367_v8, 7 }
  0xb8   : > { %v1429_v18 = vadd.f32 %v317_v50, %v309_v17  ;;  %v703_v54 = vrot.slane %v1347_v36, 1  ;;  %v704_v56 = vrot.slane %v1367_v8, 1  ;;  %v705_v63 = vrot.slane %v1347_v36, 2 }
  0xb9   : > { %539 = vmatpush.msrb.mxu1 %v301_v62  ;;  %1185 = vmatpush.msra.mxu3 %v301_v62  ;;  %v706_v1 = vrot.slane %v1367_v8, 2  ;;  %v928_v49 = vrot.slane %v1351_v44, 1  ;;  %v929_v2 = vrot.slane %v1415_v39, 1  ;;  %v707_v7 = vrot.slane %v1347_v36, 3 }
  0xba   : > { %1161 = vmatmul.msk.f32.vlgmr.msrb.gmra.mxu1 %vm410_vm5, %v394_v27  ;;  %1168 = vmatmul.msk.f32.vlgmr.msra.gmra.mxu3 %vm410_vm5, %v401_v35  ;;  %v708_v59 = vrot.slane %v1367_v8, 3  ;;  %v930_v58 = vrot.slane %v1351_v44, 2  ;;  %v931_v11 = vrot.slane %v1415_v39, 2  ;;  %v709_v46 = vrot.slane %v1347_v36, 4 }
  0xbb   : > { %v710_v14 = vrot.slane %v1367_v8, 4  ;;  %v932_v31 = vrot.slane %v1351_v44, 3  ;;  %v933_v13 = vrot.slane %v1415_v39, 3  ;;  %v711_v15 = vrot.slane %v1347_v36, 5 }
  0xbc   : > { %v712_v45 = vrot.slane %v1367_v8, 5  ;;  %v934_v47 = vrot.slane %v1351_v44, 4  ;;  %vm766_vm14 = vcmask 1041409   ;;  %vm769_vm15 = vcmask 1042434  }
  0xbd   : > { %vm772_vm0 = vcmask 1043459   ;;  %vm775_vm2 = vcmask 1044484   ;;  %vm778_vm4 = vcmask 1045509   ;;  %vm781_vm6 = vcmask 1046534  }
  0xbe   : > { %vm784_vm7 = vcmask 1047559   ;;  %vm1058_vm8 = vcmask 1045504  }
  0xbf   : > { %1146 = vmatmul.msk.f32.gmra.mxu0 %vm410_vm5, %v395_v20  ;;  %1153 = vmatmul.msk.f32.gmra.mxu2 %vm410_vm5, %v402_v16 }
  0xc2   : > { %1162 = vmatmul.msk.f32.gmra.mxu1 %vm410_vm5, %v395_v20  ;;  %1169 = vmatmul.msk.f32.gmra.mxu3 %vm410_vm5, %v402_v16  ;;  %v935_v16 = vrot.slane %v1415_v39, 4 }
  0xc7   : > { %1147 = vmatmul.msk.f32.gmra.mxu0 %vm410_vm5, %v396_v48  ;;  %1154 = vmatmul.msk.f32.gmra.mxu2 %vm410_vm5, %v403_v19 }
  0xca   : > { %1163 = vmatmul.msk.f32.gmra.mxu1 %vm410_vm5, %v396_v48  ;;  %1170 = vmatmul.msk.f32.gmra.mxu3 %vm410_vm5, %v403_v19 }
  0xcf   : > { %1148 = vmatmul.msk.f32.gmra.mxu0 %vm410_vm5, %v397_v21  ;;  %1155 = vmatmul.msk.f32.gmra.mxu2 %vm410_vm5, %v404_v22 }
  0xd2   : > { %1164 = vmatmul.msk.f32.gmra.mxu1 %vm410_vm5, %v397_v21  ;;  %1171 = vmatmul.msk.f32.gmra.mxu3 %vm410_vm5, %v404_v22  ;;  %v713_v22 = vrot.slane %v1347_v36, 6 }
  0xd7   : > { %1149 = vmatmul.msk.f32.gmra.mxu0 %vm410_vm5, %v398_v23  ;;  %1156 = vmatmul.msk.f32.gmra.mxu2 %vm410_vm5, %v405_v24 }
  0xda   : > { %1165 = vmatmul.msk.f32.gmra.mxu1 %vm410_vm5, %v398_v23  ;;  %1172 = vmatmul.msk.f32.gmra.mxu3 %vm410_vm5, %v405_v24 }
  0xdf   : > { %1150 = vmatmul.msk.f32.gmra.mxu0 %vm410_vm5, %v399_v26  ;;  %1157 = vmatmul.msk.f32.gmra.mxu2 %vm410_vm5, %v406_v28 }
  0xe2   : > { %1166 = vmatmul.msk.f32.gmra.mxu1 %vm410_vm5, %v399_v26  ;;  %1173 = vmatmul.msk.f32.gmra.mxu3 %vm410_vm5, %v406_v28  ;;  %v714_v28 = vrot.slane %v1367_v8, 6 }
  0xe7   : > { %1151 = vmatmul.msk.f32.gmra.mxu0 %vm410_vm5, %v400_v29  ;;  %1158 = vmatmul.msk.f32.gmra.mxu2 %vm410_vm5, %v407_v30 }
  0xea   : > { %1167 = vmatmul.msk.f32.gmra.mxu1 %vm410_vm5, %v400_v29  ;;  %1174 = vmatmul.msk.f32.gmra.mxu3 %vm410_vm5, %v407_v30 }
  0xef   : > { %1159 = vmatmul.msk.f32.gmra.mxu2 %vm410_vm5, %v408_v33 }
  0xf2   : > { %1175 = vmatmul.msk.f32.gmra.mxu3 %vm410_vm5, %v408_v33 }
  0xf7   : > { %1160 = vmatmul.msk.f32.gmra.mxu2 %vm410_vm5, %v409_v37 }
  0xfa   : > { %1176 = vmatmul.msk.f32.gmra.mxu3 %vm410_vm5, %v409_v37 }
 0x134   : > { %v476_v38 = vpop.f32.mrf.mxu0 }
 0x135   : > { %v589_v40 = vmul.f32 %v476_v38, %v1396_v41  ;;  %v936_v38 = vrot.slane %v1351_v44, 5 }
 0x137   : > { %v605_v51 = vrot.slane %v589_v40, 4  ;;  %v541_v53 = vpop.f32.mrf.mxu1 }
 0x138   : > { %v590_v57 = vmul.f32 %v541_v53, %v1429_v18 }
 0x139   : > { %v606_v0 = vadd.f32 %v605_v51, %v589_v40 }
 0x13a   : > { %v611_v3 = vrot.slane %v590_v57, 4  ;;  %v497_v6 = vpop.f32.mrf.mxu2 }
 0x13b   : > { %v607_v9 = vrot.slane %v606_v0, 2  ;;  %v603_v10 = vmul.f32 %v497_v6, %v1396_v41 }
 0x13c   : > { %v612_v60 = vadd.f32 %v611_v3, %v590_v57  ;;  %v479_v61 = vpop.f32.mrf.mxu0 }
 0x13d   : > { %v608_v25 = vadd.f32 %v607_v9, %v606_v0  ;;  %v689_v34 = vrot.slane %v603_v10, 4  ;;  %v562_v27 = vpop.f32.mrf.mxu3  ;;  %v591_v35 = vmul.f32 %v479_v61, %v1396_v41 }
 0x13e   : > { %v613_v32 = vrot.slane %v612_v60, 2  ;;  %v604_v42 = vmul.f32 %v562_v27, %v1429_v18 }
 0x13f   : > { %v609_v62 = vrot.slane %v608_v25, 1  ;;  %v690_v17 = vadd.f32 %v689_v34, %v603_v10  ;;  %v617_v50 = vrot.slane %v591_v35, 4  ;;  %v544_v20 = vpop.f32.mrf.mxu1  ;;  %v937_v10 = vrot.slane %v1415_v39, 5 }
 0x140   : > { %v614_v48 = vadd.f32 %v613_v32, %v612_v60  ;;  %v695_v19 = vrot.slane %v604_v42, 4  ;;  %v592_v21 = vmul.f32 %v544_v20, %v1429_v18 }
 0x141   : > { %v610_v23 = vadd.f32 %v609_v62, %v608_v25  ;;  %v691_v24 = vrot.slane %v690_v17, 2  ;;  %v618_v26 = vadd.f32 %v617_v50, %v591_v35 }
 0x142   : > { %v615_v29 = vrot.slane %v614_v48, 1  ;;  %v696_v30 = vadd.f32 %v695_v19, %v604_v42  ;;  %v623_v33 = vrot.slane %v592_v21, 4  ;;  %v500_v37 = vpop.f32.mrf.mxu2 }
 0x143   : > { %v733_v40 = vmul.f32 %v610_v23, %v1347_v36  ;;  %v692_v51 = vadd.f32 %v691_v24, %v690_v17  ;;  %v619_v53 = vrot.slane %v618_v26, 2  ;;  %v814_v57 = vmul.f32 %v500_v37, %v1349_v43 }
 0x144   : > { %v616_v0 = vadd.f32 %v615_v29, %v614_v48  ;;  %v697_v3 = vrot.slane %v696_v30, 2  ;;  %v624_v6 = vadd.f32 %v623_v33, %v592_v21  ;;  %v482_v9 = vpop.f32.mrf.mxu0 }
 0x145   : > { %v693_v60 = vrot.slane %v692_v51, 1  ;;  %v620_v61 = vadd.f32 %v619_v53, %v618_v26  ;;  %v830_v25 = vrot.slane %v814_v57, 4  ;;  %v565_v34 = vpop.f32.mrf.mxu3  ;;  %v593_v27 = vmul.f32 %v482_v9, %v1396_v41 }
 0x146   : > { %v734_v35 = vmul.f32 %v616_v0, %v1367_v8  ;;  %v698_v32 = vadd.f32 %v697_v3, %v696_v30  ;;  %v625_v42 = vrot.slane %v624_v6, 2  ;;  %v815_v62 = vmul.f32 %v565_v34, %v1379_v12 }
 0x147   : > { %v694_v17 = vadd.f32 %v693_v60, %v692_v51  ;;  %v621_v50 = vrot.slane %v620_v61, 1  ;;  %v831_v20 = vadd.f32 %v830_v25, %v814_v57  ;;  %v629_v48 = vrot.slane %v593_v27, 4  ;;  %v547_v19 = vpop.f32.mrf.mxu1 }
 0x148   : > { %v699_v21 = vrot.slane %v698_v32, 1  ;;  %v626_v23 = vadd.f32 %v625_v42, %v624_v6  ;;  %v836_v24 = vrot.slane %v815_v62, 4  ;;  %v594_v26 = vmul.f32 %v547_v19, %v1429_v18 }
 0x149   : > { %v1541_v29 = vmul.f32 %v715_v52, %v694_v17  ;;  %v622_v33 = vadd.f32 %v621_v50, %v620_v61  ;;  %v832_v37 = vrot.slane %v831_v20, 2  ;;  %v630_v30 = vadd.f32 %v629_v48, %v593_v27 }
 0x14a   : > { %v700_v53 = vadd.f32 %v699_v21, %v698_v32  ;;  %v627_v0 = vrot.slane %v626_v23, 1  ;;  %v837_v3 = vadd.f32 %v836_v24, %v815_v62  ;;  %v635_v51 = vrot.slane %v594_v26, 4  ;;  %v503_v9 = vpop.f32.mrf.mxu2 }
 0x14b   : > { %v735_v57 = vmul.f32 %v703_v54, %v622_v33  ;;  %v833_v6 = vadd.f32 %v832_v37, %v831_v20  ;;  %v631_v60 = vrot.slane %v630_v30, 2  ;;  %v816_v62 = vmul.f32 %v503_v9, %v1349_v43 }
 0x14c   : > { %v1547_v25 = vmul.f32 %v716_v55, %v700_v53  ;;  %v628_v52 = vadd.f32 %v627_v0, %v626_v23  ;;  %v838_v34 = vrot.slane %v837_v3, 2  ;;  %v636_v61 = vadd.f32 %v635_v51, %v594_v26  ;;  %v485_v42 = vpop.f32.mrf.mxu0 }
 0x14d   : > { %v765_v27 = vrot.slane %v735_v57, 7  ;;  %v834_v32 = vrot.slane %v833_v6, 1  ;;  %v632_v17 = vadd.f32 %v631_v60, %v630_v30  ;;  %v568_v50 = vpop.f32.mrf.mxu3  ;;  %v842_v23 = vrot.slane %v816_v62, 4 }
 0x14e   : > { %v736_v54 = vmul.f32 %v704_v56, %v628_v52  ;;  %v839_v48 = vadd.f32 %v838_v34, %v837_v3  ;;  %v637_v20 = vrot.slane %v636_v61, 2  ;;  %v817_v37 = vmul.f32 %v568_v50, %v1379_v12 }
 0x14f   : > { %v767_v19 = vsel %vm766_vm14, %v765_v27, %v733_v40  ;;  %v835_v55 = vadd.f32 %v834_v32, %v833_v6  ;;  %v633_v21 = vrot.slane %v632_v17, 1  ;;  %v550_v30 = vpop.f32.mrf.mxu1  ;;  %v843_v51 = vadd.f32 %v842_v23, %v816_v62 }
 0x150   : > { %v786_v24 = vrot.slane %v736_v54, 7  ;;  %v840_v26 = vrot.slane %v839_v48, 1  ;;  %v638_v33 = vadd.f32 %v637_v20, %v636_v61  ;;  %v595_v56 = vmul.f32 %v485_v42, %v1396_v41 }
 0x151   : > { %v1555_v53 = vmul.f32 %v835_v55, %v1351_v44  ;;  %v634_v0 = vadd.f32 %v633_v21, %v632_v17  ;;  %v848_v57 = vrot.slane %v817_v37, 4  ;;  %v844_v52 = vrot.slane %v843_v51, 2 }
 0x152   : > { %v787_v3 = vsel %vm766_vm14, %v786_v24, %v734_v35  ;;  %v841_v9 = vadd.f32 %v840_v26, %v839_v48  ;;  %v639_v40 = vrot.slane %v638_v33, 1  ;;  %v506_v6 = vpop.f32.mrf.mxu2  ;;  %v641_v34 = vrot.slane %v595_v56, 4 }
 0x153   : > { %v737_v60 = vmul.f32 %v705_v63, %v634_v0  ;;  %v596_v61 = vmul.f32 %v550_v30, %v1429_v18  ;;  %v849_v17 = vadd.f32 %v848_v57, %v817_v37  ;;  %v818_v42 = vmul.f32 %v506_v6, %v1349_v43 }
 0x154   : > { %v1563_v27 = vmul.f32 %v841_v9, %v1415_v39  ;;  %v640_v32 = vadd.f32 %v639_v40, %v638_v33  ;;  %v845_v35 = vadd.f32 %v844_v52, %v843_v51  ;;  %v642_v50 = vadd.f32 %v641_v34, %v595_v56  ;;  %v488_v23 = vpop.f32.mrf.mxu0 }
 0x155   : > { %v768_v62 = vrot.slane %v737_v60, 6  ;;  %v647_v54 = vrot.slane %v596_v61, 4  ;;  %v571_v48 = vpop.f32.mrf.mxu3  ;;  %v850_v63 = vrot.slane %v849_v17, 2  ;;  %v854_v55 = vrot.slane %v818_v42, 4 }
 0x156   : > { %v738_v20 = vmul.f32 %v706_v1, %v640_v32  ;;  %v819_v21 = vmul.f32 %v571_v48, %v1379_v12  ;;  %v846_v26 = vrot.slane %v845_v35, 1  ;;  %v643_v33 = vrot.slane %v642_v50, 2 }
 0x157   : > { %v770_v24 = vsel %vm769_vm15, %v768_v62, %v767_v19  ;;  %v648_v37 = vadd.f32 %v647_v54, %v596_v61  ;;  %v851_v0 = vadd.f32 %v850_v63, %v849_v17  ;;  %v855_v51 = vadd.f32 %v854_v55, %v818_v42  ;;  %v553_v54 = vpop.f32.mrf.mxu1 }
 0x158   : > { %v788_v30 = vrot.slane %v738_v20, 6  ;;  %v860_v56 = vrot.slane %v819_v21, 4  ;;  %v847_v9 = vadd.f32 %v846_v26, %v845_v35  ;;  %v644_v40 = vadd.f32 %v643_v33, %v642_v50 }
 0x159   : > { %v649_v57 = vrot.slane %v648_v37, 2  ;;  %v597_v1 = vmul.f32 %v488_v23, %v1396_v41  ;;  %v852_v60 = vrot.slane %v851_v0, 1  ;;  %v856_v52 = vrot.slane %v855_v51, 2 }
 0x15a   : > { %v789_v6 = vsel %vm769_vm15, %v788_v30, %v787_v3  ;;  %v861_v34 = vadd.f32 %v860_v56, %v819_v21  ;;  %v509_v32 = vpop.f32.mrf.mxu2  ;;  %v960_v19 = vmul.f32 %v928_v49, %v847_v9  ;;  %v645_v61 = vrot.slane %v644_v40, 1 }
 0x15b   : > { %v650_v62 = vadd.f32 %v649_v57, %v648_v37  ;;  %v653_v17 = vrot.slane %v597_v1, 4  ;;  %v783_v42 = vrot.slane %v1541_v29, 1  ;;  %v853_v35 = vadd.f32 %v852_v60, %v851_v0 }
 0x15c   : > { %v857_v50 = vadd.f32 %v856_v52, %v855_v51  ;;  %v862_v48 = vrot.slane %v861_v34, 2  ;;  %v990_v20 = vrot.slane %v960_v19, 7  ;;  %v646_v63 = vadd.f32 %v645_v61, %v644_v40 }
 0x15d   : > { %v651_v55 = vrot.slane %v650_v62, 1  ;;  %v654_v3 = vadd.f32 %v653_v17, %v597_v1  ;;  %v574_v23 = vpop.f32.mrf.mxu3  ;;  %v961_v21 = vmul.f32 %v929_v2, %v853_v35  ;;  %v598_v49 = vmul.f32 %v553_v54, %v1429_v18  ;;  %v491_v1 = vpop.f32.mrf.mxu0 }
 0x15e   : > { %v858_v26 = vrot.slane %v857_v50, 1  ;;  %v863_v33 = vadd.f32 %v862_v48, %v861_v34  ;;  %v991_v37 = vsel %vm766_vm14, %v990_v20, %v1555_v53  ;;  %v739_v30 = vmul.f32 %v707_v7, %v646_v63 }
 0x15f   : > { %v652_v0 = vadd.f32 %v651_v55, %v650_v62  ;;  %v655_v51 = vrot.slane %v654_v3, 2  ;;  %v1004_v56 = vrot.slane %v961_v21, 7  ;;  %v659_v57 = vrot.slane %v598_v49, 4 }
 0x160   : > { %v859_v9 = vadd.f32 %v858_v26, %v857_v50  ;;  %v864_v40 = vrot.slane %v863_v33, 1  ;;  %v771_v60 = vrot.slane %v739_v30, 5  ;;  %v820_v34 = vmul.f32 %v509_v32, %v1349_v43 }
 0x161   : > { %v740_v2 = vmul.f32 %v708_v59, %v652_v0  ;;  %v656_v52 = vadd.f32 %v655_v51, %v654_v3  ;;  %v1005_v53 = vsel %vm766_vm14, %v1004_v56, %v1563_v27  ;;  %v660_v61 = vadd.f32 %v659_v57, %v598_v49  ;;  %v556_v3 = vpop.f32.mrf.mxu1 }
 0x162   : > { %v962_v7 = vmul.f32 %v930_v58, %v859_v9  ;;  %v865_v19 = vadd.f32 %v864_v40, %v863_v33  ;;  %v512_v62 = vpop.f32.mrf.mxu2  ;;  %v773_v17 = vsel %vm772_vm0, %v771_v60, %v770_v24  ;;  %v866_v50 = vrot.slane %v820_v34, 4 }
 0x163   : > { %v790_v54 = vrot.slane %v740_v2, 5  ;;  %v657_v35 = vrot.slane %v656_v52, 1  ;;  %v661_v20 = vrot.slane %v660_v61, 2  ;;  %v821_v32 = vmul.f32 %v574_v23, %v1379_v12 }
 0x164   : > { %v992_v48 = vrot.slane %v962_v7, 6  ;;  %v963_v59 = vmul.f32 %v931_v11, %v865_v19  ;;  %v867_v55 = vadd.f32 %v866_v50, %v820_v34  ;;  %v599_v58 = vmul.f32 %v491_v1, %v1396_v41 }
 0x165   : > { %v791_v27 = vsel %vm772_vm0, %v790_v54, %v789_v6  ;;  %v658_v63 = vadd.f32 %v657_v35, %v656_v52  ;;  %v577_v21 = vpop.f32.mrf.mxu3  ;;  %v662_v33 = vadd.f32 %v661_v20, %v660_v61  ;;  %v872_v49 = vrot.slane %v821_v32, 4  ;;  %v494_v52 = vpop.f32.mrf.mxu0 }
 0x166   : > { %v993_v24 = vsel %vm769_vm15, %v992_v48, %v991_v37  ;;  %v1006_v26 = vrot.slane %v963_v59, 6  ;;  %v868_v11 = vrot.slane %v867_v55, 2  ;;  %v665_v0 = vrot.slane %v599_v58, 4 }
 0x167   : > { %v741_v30 = vmul.f32 %v709_v46, %v658_v63  ;;  %v663_v6 = vrot.slane %v662_v33, 1  ;;  %v873_v51 = vadd.f32 %v872_v49, %v821_v32  ;;  %v600_v56 = vmul.f32 %v556_v3, %v1429_v18 }
 0x168   : > { %v1599_v23 = vsel %vm769_vm15, %v1006_v26, %v1005_v53  ;;  %v869_v40 = vadd.f32 %v868_v11, %v867_v55  ;;  %v666_v57 = vadd.f32 %v665_v0, %v599_v58  ;;  %v822_v37 = vmul.f32 %v512_v62, %v1349_v43 }
 0x169   : > { %v774_v9 = vrot.slane %v741_v30, 4  ;;  %v664_v1 = vadd.f32 %v663_v6, %v662_v33  ;;  %v874_v60 = vrot.slane %v873_v51, 2  ;;  %v671_v2 = vrot.slane %v600_v56, 4 }
 0x16a   : > { %v823_v46 = vmul.f32 %v577_v21, %v1379_v12  ;;  %v515_v34 = vpop.f32.mrf.mxu2  ;;  %v870_v53 = vrot.slane %v869_v40, 1  ;;  %v667_v19 = vrot.slane %v666_v57, 2  ;;  %v878_v61 = vrot.slane %v822_v37, 4 }
 0x16b   : > { %v776_v7 = vsel %vm775_vm2, %v774_v9, %v773_v17  ;;  %v742_v54 = vmul.f32 %v710_v14, %v664_v1  ;;  %v875_v35 = vadd.f32 %v874_v60, %v873_v51  ;;  %v672_v50 = vadd.f32 %v671_v2, %v600_v56 }
 0x16c   : > { %v884_v48 = vrot.slane %v823_v46, 4  ;;  %v871_v59 = vadd.f32 %v870_v53, %v869_v40  ;;  %v668_v62 = vadd.f32 %v667_v19, %v666_v57  ;;  %v879_v20 = vadd.f32 %v878_v61, %v822_v37  ;;  %v559_v37 = vpop.f32.mrf.mxu1 }
 0x16d   : > { %v601_v32 = vmul.f32 %v494_v52, %v1396_v41  ;;  %v580_v63 = vpop.f32.mrf.mxu3  ;;  %v792_v55 = vrot.slane %v742_v54, 4  ;;  %v876_v58 = vrot.slane %v875_v35, 1  ;;  %v673_v3 = vrot.slane %v672_v50, 2 }
 0x16e   : > { %v885_v21 = vadd.f32 %v884_v48, %v823_v46  ;;  %v964_v17 = vmul.f32 %v932_v31, %v871_v59  ;;  %v669_v26 = vrot.slane %v668_v62, 1  ;;  %v880_v33 = vrot.slane %v879_v20, 2 }
 0x16f   : > { %v677_v49 = vrot.slane %v601_v32, 4  ;;  %v793_v14 = vsel %vm775_vm2, %v792_v55, %v791_v27  ;;  %v877_v30 = vadd.f32 %v876_v58, %v875_v35  ;;  %v674_v11 = vadd.f32 %v673_v3, %v672_v50 }
 0x170   : > { %v886_v0 = vrot.slane %v885_v21, 2  ;;  %v994_v6 = vrot.slane %v964_v17, 5  ;;  %v670_v51 = vadd.f32 %v669_v26, %v668_v62  ;;  %v881_v56 = vadd.f32 %v880_v33, %v879_v20 }
 0x171   : > { %v678_v41 = vadd.f32 %v677_v49, %v601_v32  ;;  %v965_v9 = vmul.f32 %v933_v13, %v877_v30  ;;  %v675_v40 = vrot.slane %v674_v11, 1  ;;  %v602_v13 = vmul.f32 %v559_v37, %v1429_v18 }
 0x172   : > { %v887_v57 = vadd.f32 %v886_v0, %v885_v21  ;;  %v518_v31 = vpop.f32.mrf.mxu2  ;;  %v995_v1 = vsel %vm772_vm0, %v994_v6, %v993_v24  ;;  %v743_v27 = vmul.f32 %v711_v15, %v670_v51  ;;  %v882_v60 = vrot.slane %v881_v56, 1 }
 0x173   : > { %v679_v2 = vrot.slane %v678_v41, 2  ;;  %v1008_v46 = vrot.slane %v965_v9, 5  ;;  %v676_v52 = vadd.f32 %v675_v40, %v674_v11  ;;  %v824_v48 = vmul.f32 %v515_v34, %v1349_v43 }
 0x174   : > { %v888_v53 = vrot.slane %v887_v57, 1  ;;  %v777_v19 = vrot.slane %v743_v27, 3  ;;  %v883_v61 = vadd.f32 %v882_v60, %v881_v56  ;;  %v683_v32 = vrot.slane %v602_v13, 4 }
 0x175   : > { %v680_v54 = vadd.f32 %v679_v2, %v678_v41  ;;  %v583_v35 = vpop.f32.mrf.mxu3  ;;  %v1009_v50 = vsel %vm772_vm0, %v1008_v46, %v1599_v23  ;;  %v744_v24 = vmul.f32 %v712_v45, %v676_v52  ;;  %v890_v58 = vrot.slane %v824_v48, 4 }
 0x176   : > { %v889_v15 = vadd.f32 %v888_v53, %v887_v57  ;;  %v779_v59 = vsel %vm778_vm4, %v777_v19, %v776_v7  ;;  %v966_v62 = vmul.f32 %v934_v47, %v883_v61  ;;  %v825_v23 = vmul.f32 %v580_v63, %v1379_v12 }
 0x177   : > { %v681_v20 = vrot.slane %v680_v54, 1  ;;  %v794_v55 = vrot.slane %v744_v24, 3  ;;  %v684_v45 = vadd.f32 %v683_v32, %v602_v13  ;;  %v826_v17 = vmul.f32 %v518_v31, %v1349_v43 }
 0x178   : > { %v967_v18 = vmul.f32 %v935_v16, %v889_v15  ;;  %v996_v3 = vrot.slane %v966_v62, 4  ;;  %v891_v26 = vadd.f32 %v890_v58, %v824_v48  ;;  %v896_v33 = vrot.slane %v825_v23, 4 }
 0x179   : > { %v682_v21 = vadd.f32 %v681_v20, %v680_v54  ;;  %v795_v34 = vsel %vm778_vm4, %v794_v55, %v793_v14  ;;  %v685_v16 = vrot.slane %v684_v45, 2  ;;  %v902_v11 = vrot.slane %v826_v17, 4 }
 0x17a   : > { %v1010_v7 = vrot.slane %v967_v18, 4  ;;  %v521_v47 = vpop.f32.mrf.mxu2  ;;  %v997_v49 = vsel %vm775_vm2, %v996_v3, %v995_v1  ;;  %v892_v0 = vrot.slane %v891_v26, 2  ;;  %v897_v6 = vadd.f32 %v896_v33, %v825_v23 }
 0x17b   : > { %v745_v30 = vmul.f32 %v713_v22, %v682_v21  ;;  %v827_v51 = vmul.f32 %v583_v35, %v1379_v12  ;;  %v686_v41 = vadd.f32 %v685_v16, %v684_v45  ;;  %v903_v14 = vadd.f32 %v902_v11, %v826_v17 }
 0x17c   : > { %v1011_v63 = vsel %vm775_vm2, %v1010_v7, %v1009_v50  ;;  %v828_v9 = vmul.f32 %v521_v47, %v1349_v43  ;;  %v893_v57 = vadd.f32 %v892_v0, %v891_v26  ;;  %v898_v37 = vrot.slane %v897_v6, 2 }
 0x17d   : > { %v780_v56 = vrot.slane %v745_v30, 2  ;;  %v586_v40 = vpop.f32.mrf.mxu3  ;;  %v908_v31 = vrot.slane %v827_v51, 4  ;;  %v687_v1 = vrot.slane %v686_v41, 1  ;;  %v904_v27 = vrot.slane %v903_v14, 2 }
 0x17e   : > { %v829_v36 = vmul.f32 %v586_v40, %v1379_v12  ;;  %v914_v60 = vrot.slane %v828_v9, 4  ;;  %v894_v46 = vrot.slane %v893_v57, 1  ;;  %v899_v52 = vadd.f32 %v898_v37, %v897_v6 }
 0x17f   : > { %v782_v22 = vsel %vm781_vm6, %v780_v56, %v779_v59  ;;  %v909_v53 = vadd.f32 %v908_v31, %v827_v51  ;;  %v688_v19 = vadd.f32 %v687_v1, %v686_v41  ;;  %v905_v43 = vadd.f32 %v904_v27, %v903_v14 }
 0x180   : > { %v785_v2 = vsel %vm784_vm7, %v783_v42, %v782_v22  ;;  %v938_v61 = vrot.slane %v1351_v44, 6  ;;  %v915_v54 = vadd.f32 %v914_v60, %v828_v9  ;;  %v895_v13 = vadd.f32 %v894_v46, %v893_v57 }
 0x181   : > { %v900_v35 = vrot.slane %v899_v52, 1  ;;  %v910_v12 = vrot.slane %v909_v53, 2  ;;  %v920_v50 = vrot.slane %v829_v36, 4  ;;  %v798_v24 = vrot.slane %v1547_v25, 1 }
 0x182   : > { %v746_v15 = vmul.f32 %v714_v28, %v688_v19  ;;  %v906_v29 = vrot.slane %v905_v43, 1  ;;  %v916_v48 = vrot.slane %v915_v54, 2  ;;  %v968_v42 = vmul.f32 %v936_v38, %v895_v13 }
 0x183   : > { %v901_v59 = vadd.f32 %v900_v35, %v899_v52  ;;  %v911_v62 = vadd.f32 %v910_v12, %v909_v53  ;;  %v921_v20 = vadd.f32 %v920_v50, %v829_v36  ;;  %v802_v32 = vrot.slane %v785_v2, 4 }
 0x184   : > { %v796_v55 = vrot.slane %v746_v15, 2  ;;  %v907_v18 = vadd.f32 %v906_v29, %v905_v43  ;;  %v917_v58 = vadd.f32 %v916_v48, %v915_v54  ;;  %v998_v23 = vrot.slane %v968_v42, 3 }
 0x185   : > { %v969_v3 = vmul.f32 %v937_v10, %v901_v59  ;;  %v912_v25 = vrot.slane %v911_v62, 1  ;;  %v922_v21 = vrot.slane %v921_v20, 2  ;;  %v939_v45 = vrot.slane %v1415_v39, 6 }
 0x186   : > { %v797_v8 = vsel %vm781_vm6, %v796_v55, %v795_v34  ;;  %v970_v28 = vmul.f32 %v938_v61, %v907_v18  ;;  %v918_v17 = vrot.slane %v917_v58, 1  ;;  %v999_v7 = vsel %vm778_vm4, %v998_v23, %v997_v49 }
 0x187   : > { %v799_v38 = vsel %vm784_vm7, %v798_v24, %v797_v8  ;;  %v1012_v26 = vrot.slane %v969_v3, 3  ;;  %v913_v33 = vadd.f32 %v912_v25, %v911_v62  ;;  %v940_v16 = vrot.slane %v1351_v44, 7 }
 0x188   : > { %v1000_v47 = vrot.slane %v970_v28, 2  ;;  %v919_v30 = vadd.f32 %v918_v17, %v917_v58  ;;  %v803_v11 = vadd.f32 %v802_v32, %v785_v2  ;;  %v923_v6 = vadd.f32 %v922_v21, %v921_v20  ;;  %v1206_v17 = vld [vmem:[%s1250_s17] sm:$0xff] }
 0x189   : > { %v1013_v10 = vsel %vm778_vm4, %v1012_v26, %v1011_v63  ;;  %v971_v0 = vmul.f32 %v939_v45, %v913_v33  ;;  %v808_v34 = vrot.slane %v799_v38, 4  ;;  %v941_v37 = vrot.slane %v1415_v39, 7 }
 0x18a   : > { %v1001_v51 = vsel %vm781_vm6, %v1000_v47, %v999_v7  ;;  %v972_v56 = vmul.f32 %v940_v16, %v919_v30  ;;  %v924_v14 = vrot.slane %v923_v6, 1  ;;  %v804_v40 = vrot.slane %v803_v11, 2 }
 0x18b   : > { %v1014_v41 = vrot.slane %v971_v0, 2  ;;  %v809_v31 = vadd.f32 %v808_v34, %v799_v38 }
 0x18c   : > { %v1002_v9 = vrot.slane %v972_v56, 1  ;;  %v925_v57 = vadd.f32 %v924_v14, %v923_v6  ;;  %v805_v22 = vadd.f32 %v804_v40, %v803_v11 }
 0x18d   : > { %v1015_v49 = vsel %vm781_vm6, %v1014_v41, %v1013_v10  ;;  %v810_v60 = vrot.slane %v809_v31, 2  ;;  %v1207_v10 = vld [vmem:[%s1250_s17 + $0x8] sm:$0xff] }
 0x18e   : > { %v1003_v44 = vsel %vm784_vm7, %v1002_v9, %v1001_v51  ;;  %v973_v63 = vmul.f32 %v941_v37, %v925_v57  ;;  %v806_v53 = vrot.slane %v805_v22, 1 }
 0x18f   : > { %v1020_v36 = vrot.slane %v1003_v44, 4  ;;  %v811_v43 = vadd.f32 %v810_v60, %v809_v31 }
 0x190   : > { %v1016_v27 = vrot.slane %v973_v63, 1  ;;  %v807_v39 = vadd.f32 %v806_v53, %v805_v22 }
 0x191   : > { %v1021_v1 = vadd.f32 %v1020_v36, %v1003_v44  ;;  %v812_v12 = vrot.slane %v811_v43, 1 }
 0x192   : > { %v1017_v46 = vsel %vm784_vm7, %v1016_v27, %v1015_v49 }
 0x193   : > { %v1022_v2 = vrot.slane %v1021_v1, 2  ;;  %v1026_v52 = vrot.slane %v1017_v46, 4  ;;  %v813_v48 = vadd.f32 %v812_v12, %v811_v43 }
 0x195   : > { %v1023_v19 = vadd.f32 %v1022_v2, %v1021_v1  ;;  %v1027_v61 = vadd.f32 %v1026_v52, %v1017_v46 }
 0x197   : > { %v1024_v54 = vrot.slane %v1023_v19, 1  ;;  %v1028_v13 = vrot.slane %v1027_v61, 2 }
 0x199   : > { %v1025_v35 = vadd.f32 %v1024_v54, %v1023_v19  ;;  %v1029_v50 = vadd.f32 %v1028_v13, %v1027_v61 }
 0x19b   : > { %v1032_v24 = vadd.f32 %v1025_v35, %v807_v39  ;;  %v1030_v15 = vrot.slane %v1029_v50, 1 }
 0x19d   : > { %v1034_v29 = vadd.f32 1e-08, %v1032_v24  ;;  %v1031_v42 = vadd.f32 %v1030_v15, %v1029_v50 }
 0x19f   : > { %1202 = vrcp.f32 %v1034_v29  ;;  %v1033_v59 = vadd.f32 %v1031_v42, %v813_v48 }
 0x1a1   : > { %v1035_v62 = vadd.f32 1e-08, %v1033_v59 }
 0x1a3   : > { %1204 = vrcp.f32 %v1035_v62 }
 0x1a5   : > { %v1203_v20 = vpop.eup %1202 }
 0x1a6   : > { %v1038_v32 = vmul.f32 %v1203_v20, %v1034_v29 }
 0x1a8   : > { %v1040_v55 = vsub.f32 2.0, %v1038_v32 }
 0x1a9   : > { %v1205_v18 = vpop.eup %1204 }
 0x1aa   : > { %v1042_v58 = vmul.f32 %v1203_v20, %v1040_v55  ;;  %v1039_v23 = vmul.f32 %v1205_v18, %v1035_v62 }
 0x1ac   : > { %v1044_v3 = vmul.f32 %v1042_v58, %v807_v39  ;;  %v1046_v25 = vmul.f32 %v1042_v58, %v1025_v35  ;;  %v1041_v21 = vsub.f32 2.0, %v1039_v23 }
 0x1ae   : > { %v1048_v8 = vperm.slane %v1044_v3, 0  ;;  %v1052_v28 = vperm.slane %v1046_v25, 0  ;;  %v1043_v45 = vmul.f32 %v1205_v18, %v1041_v21 }
 0x1b0   : > { %v1050_v38 = vmul.f32 %v1206_v17, %v1048_v8  ;;  %v1054_v7 = vmul.f32 %v1052_v28, %v1258_v4  ;;  %v1045_v26 = vmul.f32 %v1043_v45, %v813_v48  ;;  %v1047_v33 = vmul.f32 %v1043_v45, %v1031_v42 }
 0x1b2   : > { %v1056_v47 = vadd.f32 %v1054_v7, %v1050_v38  ;;  %v1049_v30 = vperm.slane %v1045_v26, 0  ;;  %v1053_v16 = vperm.slane %v1047_v33, 0 }
 0x1b4   : > { %v1059_v11 = vsel %vm1058_vm8, %v1056_v47, 0.0  ;;  %v1051_v0 = vmul.f32 %v1207_v10, %v1049_v30  ;;  %v1055_v6 = vmul.f32 %v1053_v16, %v1260_v5 }
 0x1b5   : > { %1061 = vst [vmem:[%s190_s4] sm:$0xff] %v1059_v11 }
 0x1b6   : > { %v1057_v34 = vadd.f32 %v1055_v6, %v1051_v0 }
 0x1b8   : > { %v1060_v51 = vsel %vm1058_vm8, %v1057_v34, 0.0 }
 0x1b9   : > { %1062 = vst [vmem:[%s190_s4 + $0x8] sm:$0xff] %v1060_v51 }
 0x1ba PF: > { %s13_s12 = sadd.s32 1, %s1214_s12  }
 0x1bb   : > { %p10_p4 = scmp.ge.s32.totalorder %s13_s12, 4  }
 0x1bd   :  { %12 = sbr.rel (!%p10_p4) target bundleno = 1 (0x1), region = 65 }

</bundles_post_ra>
